<compile_context>
chip_gen: v6e
topology: v6e:2x2x1
jax: 0.10.0
libtpu: 0.0.40
codegen_flags: <defaults>
</compile_context>

<pallas_src>
import jax
import jax.numpy as jnp
from jax.experimental import pallas as pl
from jax.experimental.pallas import tpu as pltpu

EPS = 1e-5


# ----------------------------------------------------------------------------- kernel
def _fnn_kernel(x_ref, w1_ref, b1_ref, w2_ref, b2_ref, w3_ref, b3_ref, o_ref):
    """One batch tile: (fc1+BN)->ReLU->(fc2+BN)->ReLU->fc3 (dropout = identity)."""
    tb = x_ref.shape[0]
    half = tb // 2  # tb is forced to a multiple of 16 by the wrapper

    # Resident weights (bf16, BN already folded) / biases (f32): load once.
    w1 = w1_ref[...]; b1 = b1_ref[...]
    w2 = w2_ref[...]; b2 = b2_ref[...]
    w3 = w3_ref[...]; b3 = b3_ref[...]

    # Two independent sub-chains -> the LLO scheduler can overlap one chain's MXU
    # matmul with the other chain's VPU epilogue (bias add + ReLU + bf16 cast).
    for c in range(2):
        rows = pl.ds(c * half, half)
        x = x_ref[rows, :].astype(jnp.bfloat16)          # in-kernel bf16 cast of x

        h1 = jnp.dot(x, w1, preferred_element_type=jnp.float32) + b1
        h1 = jnp.maximum(h1, 0.0).astype(jnp.bfloat16)   # dropout1 = identity (eval)

        h2 = jnp.dot(h1, w2, preferred_element_type=jnp.float32) + b2
        h2 = jnp.maximum(h2, 0.0).astype(jnp.bfloat16)   # dropout2 = identity (eval)

        out = jnp.dot(h2, w3, preferred_element_type=jnp.float32) + b3
        o_ref[rows, :] = out.astype(o_ref.dtype)


# ----------------------------------------------------------------------------- helpers
def _round_up(n, m):
    return ((n + m - 1) // m) * m


def _pad2d(a, rows, cols):
    return jnp.pad(a, ((0, rows - a.shape[0]), (0, cols - a.shape[1])))


def _fold_bn(w, b, gamma, beta, mean, var):
    """Fold BatchNorm1d (eval) into the preceding Linear (w: (in, out), b: (1, out))."""
    scale = gamma * jax.lax.rsqrt(var + EPS)          # (1, out)
    return w * scale, (b - mean) * scale + beta


# ----------------------------------------------------------------------------- prep
def prepare_params(params):
    """One-time host prep (hoisted out of the forward hot path).

    Folds BatchNorm1d (eval) into fc1/fc2, casts weights to bf16 and zero-pads the
    hidden/output feature dims to 128 lanes. Call once; reuse for every forward.

    Note: for layers with very small running_var the folded scale gamma*rsqrt(var+eps)
    is large and bf16 rounding of w*scale can drift from the f32 module; the folded
    biases are kept in f32 to limit that drift.
    """
    d_in, d_h1 = params["w1"].shape
    d_h2 = params["w2"].shape[1]
    d_out = params["w3"].shape[1]
    dh1_p, dh2_p, dout_p = (_round_up(d, 128) for d in (d_h1, d_h2, d_out))

    w1, b1 = _fold_bn(params["w1"], params["b1"], params["g1"], params["be1"],
                      params["m1"], params["v1"])
    w2, b2 = _fold_bn(params["w2"], params["b2"], params["g2"], params["be2"],
                      params["m2"], params["v2"])
    w3, b3 = params["w3"], params["b3"]

    return dict(
        # w1 keeps its native K (= d_in) so x never needs feature padding; the
        # hidden/output N dims are zero-padded to 128 lanes (lane-dense MXU / stores).
        w1=_pad2d(w1.astype(jnp.bfloat16), d_in, dh1_p),
        b1=_pad2d(b1.astype(jnp.float32), 1, dh1_p),
        w2=_pad2d(w2.astype(jnp.bfloat16), dh1_p, dh2_p),
        b2=_pad2d(b2.astype(jnp.float32), 1, dh2_p),
        w3=_pad2d(w3.astype(jnp.bfloat16), dh2_p, dout_p),
        b3=_pad2d(b3.astype(jnp.float32), 1, dout_p),
        d_in=d_in, d_out=d_out,
    )


# ----------------------------------------------------------------------------- wrapper
def fnn_forward(x, prep, *, block_b=1024, out_dtype=jnp.bfloat16):
    """Forward pass. `prep` comes from prepare_params() (call once, reuse).

    x: (B, d_in) float32. Returns (B, d_out) in `out_dtype` (bf16 by default).
    """
    B, d_in = x.shape
    if d_in != prep["d_in"]:
        raise ValueError(f"x feature dim {d_in} != prepared d_in {prep['d_in']}")
    d_out = prep["d_out"]
    w1, b1 = prep["w1"], prep["b1"]
    w2, b2 = prep["w2"], prep["b2"]
    w3, b3 = prep["w3"], prep["b3"]
    dh1_p, dh2_p, dout_p = w1.shape[1], w2.shape[1], w3.shape[1]

    # Batch tile: multiple of 16 (two >=8-sublane sub-chains), capped so the grid has
    # at least 2 steps (both v7x TensorCores used), bounded above by block_b
    # (default 1024: amortizes the ~0.35us per-grid-step overhead on v5e/v6e).
    tb = max(16, min(_round_up(block_b, 16), _round_up(pl.cdiv(B, 2), 16)))
    b_p = _round_up(B, tb)
    grid_b = b_p // tb

    # Only the batch dim is padded (and only when needed); x keeps its native dtype
    # and native feature width -> no inflated padded HBM copy of the activation stream.
    x_in = x if b_p == B else jnp.pad(x, ((0, b_p - B), (0, 0)))

    def resident(shape):
        # Constant index_map -> block stays in VMEM across the whole grid;
        # Buffered(1) -> single pipeline buffer (no 2x copy of resident weights).
        return pl.BlockSpec(shape, lambda i: (0, 0), pipeline_mode=pl.Buffered(1))

    in_specs = [
        pl.BlockSpec((tb, d_in), lambda i: (i, 0)),        # x: the only pipelined stream
        resident((d_in, dh1_p)),   resident((1, dh1_p)),   # fc1 (+BN folded)
        resident((dh1_p, dh2_p)),  resident((1, dh2_p)),   # fc2 (+BN folded)
        resident((dh2_p, dout_p)), resident((1, dout_p)),  # fc3
    ]
    out_spec = pl.BlockSpec((tb, dout_p), lambda i: (i, 0))

    out_itemsize = jnp.dtype(out_dtype).itemsize
    weight_bytes = ((w1.size + w2.size + w3.size) * 2        # bf16, single-buffered
                    + (b1.size + b2.size + b3.size) * 4)     # f32
    io_bytes = 2 * tb * (d_in * 4 + dout_p * out_itemsize)   # double-buffered x / out tiles
    interm_bytes = tb * (d_in * 2 + (dh1_p + dh2_p) * 6 + dout_p * 4)  # f32 acc + bf16 casts
    vmem_need = weight_bytes + io_bytes + interm_bytes

    try:
        vmem_cap = int(pltpu.get_tpu_info().vmem_capacity_bytes)
    except Exception:
        vmem_cap = 64 << 20                                  # conservative (v7x per-TC)
    vmem_clamp = int(0.75 * vmem_cap)                        # leave headroom for Mosaic
    if weight_bytes + io_bytes > vmem_clamp:
        # TODO(synk): add a K/N-tiled reduction schedule (grid over K, f32 VMEM
        # accumulator, P3 pattern) for hidden dims whose weights don't fit resident.
        raise ValueError("FNN weights do not fit resident in VMEM "
                         f"({weight_bytes + io_bytes} > {vmem_clamp} bytes).")
    vmem_limit = int(min(max(int(1.25 * vmem_need), 4 << 20), vmem_clamp))

    flops = 2 * b_p * (d_in * dh1_p + dh1_p * dh2_p + dh2_p * dout_p)
    bytes_accessed = (b_p * d_in * 4 + weight_bytes + b_p * dout_p * out_itemsize)

    out_p = pl.pallas_call(
        _fnn_kernel,
        out_shape=jax.ShapeDtypeStruct((b_p, dout_p), out_dtype),
        grid=(grid_b,),
        in_specs=in_specs,
        out_specs=out_spec,
        compiler_params=pltpu.CompilerParams(
            dimension_semantics=("parallel",),   # batch tiles shard across TCs (v7x)
            vmem_limit_bytes=vmem_limit),
        cost_estimate=pl.CostEstimate(flops=flops, transcendentals=0,
                                      bytes_accessed=bytes_accessed),
    )(x_in, w1, b1, w2, b2, w3, b3)

    return out_p[:B, :d_out]


# ----------------------------------------------------------------------------- params
def init_params(key, d_in, d_h1, d_h2, d_out):
    """Deterministic synthetic init mirroring nn.Linear / nn.BatchNorm1d shapes.

    Linear weights are stored transposed: (in, out). Biases / BN params are (1, d).
    """
    ks = jax.random.split(key, 6)

    def linear(kw, kb, fan_in, fan_out):
        bound = 1.0 / jnp.sqrt(fan_in)
        w = jax.random.uniform(kw, (fan_in, fan_out), jnp.float32, -bound, bound)
        b = jax.random.uniform(kb, (1, fan_out), jnp.float32, -bound, bound)
        return w, b

    w1, b1 = linear(ks[0], ks[1], d_in, d_h1)
    w2, b2 = linear(ks[2], ks[3], d_h1, d_h2)
    w3, b3 = linear(ks[4], ks[5], d_h2, d_out)

    def bn(d):
        return (jnp.ones((1, d), jnp.float32),    # gamma
                jnp.zeros((1, d), jnp.float32),   # beta
                jnp.zeros((1, d), jnp.float32),   # running_mean
                jnp.ones((1, d), jnp.float32))    # running_var

    g1, be1, m1, v1 = bn(d_h1)
    g2, be2, m2, v2 = bn(d_h2)

    return dict(w1=w1, b1=b1, g1=g1, be1=be1, m1=m1, v1=v1,
                w2=w2, b2=b2, g2=g2, be2=be2, m2=m2, v2=v2,
                w3=w3, b3=b3)


# ----------------------------------------------------------------------------- references
def fnn_reference(x, p):
    """Pure-JAX f32 reference of the module's eval-mode forward."""
    h1 = x @ p["w1"] + p["b1"]
    h1 = (h1 - p["m1"]) * jax.lax.rsqrt(p["v1"] + EPS) * p["g1"] + p["be1"]
    h1 = jnp.maximum(h1, 0.0)
    h2 = h1 @ p["w2"] + p["b2"]
    h2 = (h2 - p["m2"]) * jax.lax.rsqrt(p["v2"] + EPS) * p["g2"] + p["be2"]
    h2 = jnp.maximum(h2, 0.0)
    return h2 @ p["w3"] + p["b3"]


def fnn_reference_bf16(x, p):
    """Reference using the same BN-folding + bf16 quantization as the kernel."""
    w1, b1 = _fold_bn(p["w1"], p["b1"], p["g1"], p["be1"], p["m1"], p["v1"])
    w2, b2 = _fold_bn(p["w2"], p["b2"], p["g2"], p["be2"], p["m2"], p["v2"])
    w1, w2, w3 = (w1.astype(jnp.bfloat16), w2.astype(jnp.bfloat16),
                  p["w3"].astype(jnp.bfloat16))
    xb = x.astype(jnp.bfloat16)
    h1 = jnp.dot(xb, w1, preferred_element_type=jnp.float32) + b1
    h1 = jnp.maximum(h1, 0.0).astype(jnp.bfloat16)
    h2 = jnp.dot(h1, w2, preferred_element_type=jnp.float32) + b2
    h2 = jnp.maximum(h2, 0.0).astype(jnp.bfloat16)
    return jnp.dot(h2, w3, preferred_element_type=jnp.float32) + p["b3"]


# ----------------------------------------------------------------------------- demo
if __name__ == "__main__":
    B, d_in, d_h1, d_h2, d_out = 50, 32, 64, 32, 8

    key = jax.random.PRNGKey(0)
    kx, kp = jax.random.split(key)
    x = jax.random.normal(kx, (B, d_in), jnp.float32)
    params = init_params(kp, d_in, d_h1, d_h2, d_out)

    prep = prepare_params(params)   # one-time weight prep (hoisted off the hot path)

    # Default block_b=1024; the >=2-grid-step cap automatically picks tb=32 for B=50,
    # so the toy problem still exercises a multi-step grid + batch padding.
    out = fnn_forward(x, prep)
    out = jax.block_until_ready(out)

    out_f32 = out.astype(jnp.float32)
    ref_bf16 = fnn_reference_bf16(x, params)   # numerically matched (bf16 path)
    ref_f32 = fnn_reference(x, params)         # original module semantics (f32)

    assert out.shape == (B, d_out)
    assert out.dtype == jnp.bfloat16
    assert jnp.allclose(out_f32, ref_bf16, atol=2e-2, rtol=2e-2), "mismatch vs bf16 reference"
    assert jnp.allclose(out_f32, ref_f32, atol=1e-1, rtol=1e-1), "mismatch vs f32 reference"

    print("KERNEL_OK")
</pallas_src>

<mosaic_0001>
module attributes {stable_mosaic.version = 11 : i64} {
  func.func @_fnn_kernel(%arg0: i32, %arg1: memref<32x32xf32, #tpu.memory_space<vmem>>, %arg2: memref<32x128xbf16, #tpu.memory_space<vmem>>, %arg3: memref<1x128xf32, #tpu.memory_space<vmem>>, %arg4: memref<128x128xbf16, #tpu.memory_space<vmem>>, %arg5: memref<1x128xf32, #tpu.memory_space<vmem>>, %arg6: memref<128x128xbf16, #tpu.memory_space<vmem>>, %arg7: memref<1x128xf32, #tpu.memory_space<vmem>>, %arg8: memref<32x128xbf16, #tpu.memory_space<vmem>>) attributes {dimension_semantics = [#tpu.dimension_semantics<parallel>], iteration_bounds = array<i64: 2>, scalar_prefetch = 0 : i64, scratch_operands = 0 : i64, tpu.core_type = #tpu.core_type<tc>, window_params = [{transform_indices = @transform_0, window_bounds = array<i64: 32, 32>}, {pipeline_mode = #tpu.pipeline_mode<synchronous>, transform_indices = @transform_1, window_bounds = array<i64: 32, 128>}, {pipeline_mode = #tpu.pipeline_mode<synchronous>, transform_indices = @transform_2, window_bounds = array<i64: 1, 128>}, {pipeline_mode = #tpu.pipeline_mode<synchronous>, transform_indices = @transform_3, window_bounds = array<i64: 128, 128>}, {pipeline_mode = #tpu.pipeline_mode<synchronous>, transform_indices = @transform_4, window_bounds = array<i64: 1, 128>}, {pipeline_mode = #tpu.pipeline_mode<synchronous>, transform_indices = @transform_5, window_bounds = array<i64: 128, 128>}, {pipeline_mode = #tpu.pipeline_mode<synchronous>, transform_indices = @transform_6, window_bounds = array<i64: 1, 128>}, {transform_indices = @transform_7, window_bounds = array<i64: 32, 128>}]} {
    %c0 = arith.constant 0 : index
    %c0_0 = arith.constant 0 : index
    %0 = vector.load %arg2[%c0, %c0_0] : memref<32x128xbf16, #tpu.memory_space<vmem>>, vector<32x128xbf16>
    %c0_1 = arith.constant 0 : index
    %c0_2 = arith.constant 0 : index
    %1 = vector.load %arg3[%c0_1, %c0_2] : memref<1x128xf32, #tpu.memory_space<vmem>>, vector<1x128xf32>
    %c0_3 = arith.constant 0 : index
    %c0_4 = arith.constant 0 : index
    %2 = vector.load %arg4[%c0_3, %c0_4] : memref<128x128xbf16, #tpu.memory_space<vmem>>, vector<128x128xbf16>
    %c0_5 = arith.constant 0 : index
    %c0_6 = arith.constant 0 : index
    %3 = vector.load %arg5[%c0_5, %c0_6] : memref<1x128xf32, #tpu.memory_space<vmem>>, vector<1x128xf32>
    %c0_7 = arith.constant 0 : index
    %c0_8 = arith.constant 0 : index
    %4 = vector.load %arg6[%c0_7, %c0_8] : memref<128x128xbf16, #tpu.memory_space<vmem>>, vector<128x128xbf16>
    %c0_9 = arith.constant 0 : index
    %c0_10 = arith.constant 0 : index
    %5 = vector.load %arg7[%c0_9, %c0_10] : memref<1x128xf32, #tpu.memory_space<vmem>>, vector<1x128xf32>
    %c0_11 = arith.constant 0 : index
    %c0_12 = arith.constant 0 : index
    %6 = vector.load %arg1[%c0_11, %c0_12] : memref<32x32xf32, #tpu.memory_space<vmem>>, vector<16x32xf32>
    %7 = arith.truncf %6 : vector<16x32xf32> to vector<16x32xbf16>
    %cst = arith.constant dense<0.000000e+00> : vector<16x128xf32>
    %8 = tpu.matmul %7, %0, %cst {dimension_numbers = #tpu.dot_dimension_numbers<[1], [0], [0], [1], [0, 0, 1, 1], [], []>} : vector<16x32xbf16>, vector<32x128xbf16>, vector<16x128xf32> -> vector<16x128xf32>
    %9 = vector.broadcast %1 : vector<1x128xf32> to vector<16x128xf32>
    %10 = arith.addf %8, %9 : vector<16x128xf32>
    %cst_13 = arith.constant 0.000000e+00 : f32
    %11 = vector.broadcast %cst_13 : f32 to vector<16x128xf32>
    %12 = arith.maximumf %10, %11 : vector<16x128xf32>
    %13 = arith.truncf %12 : vector<16x128xf32> to vector<16x128xbf16>
    %cst_14 = arith.constant dense<0.000000e+00> : vector<16x128xf32>
    %14 = tpu.matmul %13, %2, %cst_14 {dimension_numbers = #tpu.dot_dimension_numbers<[1], [0], [0], [1], [0, 0, 1, 1], [], []>} : vector<16x128xbf16>, vector<128x128xbf16>, vector<16x128xf32> -> vector<16x128xf32>
    %15 = vector.broadcast %3 : vector<1x128xf32> to vector<16x128xf32>
    %16 = arith.addf %14, %15 : vector<16x128xf32>
    %cst_15 = arith.constant 0.000000e+00 : f32
    %17 = vector.broadcast %cst_15 : f32 to vector<16x128xf32>
    %18 = arith.maximumf %16, %17 : vector<16x128xf32>
    %19 = arith.truncf %18 : vector<16x128xf32> to vector<16x128xbf16>
    %cst_16 = arith.constant dense<0.000000e+00> : vector<16x128xf32>
    %20 = tpu.matmul %19, %4, %cst_16 {dimension_numbers = #tpu.dot_dimension_numbers<[1], [0], [0], [1], [0, 0, 1, 1], [], []>} : vector<16x128xbf16>, vector<128x128xbf16>, vector<16x128xf32> -> vector<16x128xf32>
    %21 = vector.broadcast %5 : vector<1x128xf32> to vector<16x128xf32>
    %22 = arith.addf %20, %21 : vector<16x128xf32>
    %23 = arith.truncf %22 : vector<16x128xf32> to vector<16x128xbf16>
    %c0_17 = arith.constant 0 : index
    %c0_18 = arith.constant 0 : index
    %24 = vector.load %arg8[%c0_17, %c0_18] : memref<32x128xbf16, #tpu.memory_space<vmem>>, vector<16x128xbf16>
    tpu.vector_store %arg8[%c0_17, %c0_18], %23 {strides = array<i32>} : memref<32x128xbf16, #tpu.memory_space<vmem>>, vector<16x128xbf16>,
    %c16 = arith.constant 16 : index
    %c0_19 = arith.constant 0 : index
    %25 = vector.load %arg1[%c16, %c0_19] : memref<32x32xf32, #tpu.memory_space<vmem>>, vector<16x32xf32>
    %26 = arith.truncf %25 : vector<16x32xf32> to vector<16x32xbf16>
    %cst_20 = arith.constant dense<0.000000e+00> : vector<16x128xf32>
    %27 = tpu.matmul %26, %0, %cst_20 {dimension_numbers = #tpu.dot_dimension_numbers<[1], [0], [0], [1], [0, 0, 1, 1], [], []>} : vector<16x32xbf16>, vector<32x128xbf16>, vector<16x128xf32> -> vector<16x128xf32>
    %28 = vector.broadcast %1 : vector<1x128xf32> to vector<16x128xf32>
    %29 = arith.addf %27, %28 : vector<16x128xf32>
    %cst_21 = arith.constant 0.000000e+00 : f32
    %30 = vector.broadcast %cst_21 : f32 to vector<16x128xf32>
    %31 = arith.maximumf %29, %30 : vector<16x128xf32>
    %32 = arith.truncf %31 : vector<16x128xf32> to vector<16x128xbf16>
    %cst_22 = arith.constant dense<0.000000e+00> : vector<16x128xf32>
    %33 = tpu.matmul %32, %2, %cst_22 {dimension_numbers = #tpu.dot_dimension_numbers<[1], [0], [0], [1], [0, 0, 1, 1], [], []>} : vector<16x128xbf16>, vector<128x128xbf16>, vector<16x128xf32> -> vector<16x128xf32>
    %34 = vector.broadcast %3 : vector<1x128xf32> to vector<16x128xf32>
    %35 = arith.addf %33, %34 : vector<16x128xf32>
    %cst_23 = arith.constant 0.000000e+00 : f32
    %36 = vector.broadcast %cst_23 : f32 to vector<16x128xf32>
    %37 = arith.maximumf %35, %36 : vector<16x128xf32>
    %38 = arith.truncf %37 : vector<16x128xf32> to vector<16x128xbf16>
    %cst_24 = arith.constant dense<0.000000e+00> : vector<16x128xf32>
    %39 = tpu.matmul %38, %4, %cst_24 {dimension_numbers = #tpu.dot_dimension_numbers<[1], [0], [0], [1], [0, 0, 1, 1], [], []>} : vector<16x128xbf16>, vector<128x128xbf16>, vector<16x128xf32> -> vector<16x128xf32>
    %40 = vector.broadcast %5 : vector<1x128xf32> to vector<16x128xf32>
    %41 = arith.addf %39, %40 : vector<16x128xf32>
    %42 = arith.truncf %41 : vector<16x128xf32> to vector<16x128xbf16>
    %c16_25 = arith.constant 16 : index
    %c0_26 = arith.constant 0 : index
    %43 = vector.load %arg8[%c16_25, %c0_26] : memref<32x128xbf16, #tpu.memory_space<vmem>>, vector<16x128xbf16>
    tpu.vector_store %arg8[%c16_25, %c0_26], %42 {strides = array<i32>} : memref<32x128xbf16, #tpu.memory_space<vmem>>, vector<16x128xbf16>,
    return
  }
  func.func @transform_0(%arg0: i32) -> (i32, i32) {
    %c0_i32 = arith.constant 0 : i32
    %c0_i32_0 = arith.constant 0 : i32
    return %arg0, %c0_i32 : i32, i32
  }
  func.func @transform_1(%arg0: i32) -> (i32, i32) {
    %c0_i32 = arith.constant 0 : i32
    %c0_i32_0 = arith.constant 0 : i32
    %c0_i32_1 = arith.constant 0 : i32
    return %c0_i32, %c0_i32_0 : i32, i32
  }
  func.func @transform_2(%arg0: i32) -> (i32, i32) {
    %c0_i32 = arith.constant 0 : i32
    %c0_i32_0 = arith.constant 0 : i32
    %c0_i32_1 = arith.constant 0 : i32
    return %c0_i32, %c0_i32_0 : i32, i32
  }
  func.func @transform_3(%arg0: i32) -> (i32, i32) {
    %c0_i32 = arith.constant 0 : i32
    %c0_i32_0 = arith.constant 0 : i32
    %c0_i32_1 = arith.constant 0 : i32
    return %c0_i32, %c0_i32_0 : i32, i32
  }
  func.func @transform_4(%arg0: i32) -> (i32, i32) {
    %c0_i32 = arith.constant 0 : i32
    %c0_i32_0 = arith.constant 0 : i32
    %c0_i32_1 = arith.constant 0 : i32
    return %c0_i32, %c0_i32_0 : i32, i32
  }
  func.func @transform_5(%arg0: i32) -> (i32, i32) {
    %c0_i32 = arith.constant 0 : i32
    %c0_i32_0 = arith.constant 0 : i32
    %c0_i32_1 = arith.constant 0 : i32
    return %c0_i32, %c0_i32_0 : i32, i32
  }
  func.func @transform_6(%arg0: i32) -> (i32, i32) {
    %c0_i32 = arith.constant 0 : i32
    %c0_i32_0 = arith.constant 0 : i32
    %c0_i32_1 = arith.constant 0 : i32
    return %c0_i32, %c0_i32_0 : i32, i32
  }
  func.func @transform_7(%arg0: i32) -> (i32, i32) {
    %c0_i32 = arith.constant 0 : i32
    %c0_i32_0 = arith.constant 0 : i32
    return %arg0, %c0_i32 : i32, i32
  }
}

</mosaic_0001>

<bundles_post_ra>
// kernel: tpu_custom_call.1
= control target key start
LH: loop header
LB: loop body
LE: loop exit
PB: predicated region body
PF: predicated region fallthrough
CT: control target
= control target key end

     0   :  { %12 = vsyncpa [#allocation3], 0  ;;  %s1513_s0 = inlined_call_operand.vmem [shape: f32[64,32], index: 0, kind: input, shape index: {}]   ;;  %s1514_s1 = inlined_call_operand.vmem [shape: bf16[32,128], index: 1, kind: input, shape index: {}]   ;;  %s1515_s2 = inlined_call_operand.vmem [shape: f32[1,128], index: 2, kind: input, shape index: {}]   ;;  %s1516_s3 = inlined_call_operand.vmem [shape: bf16[128,128], index: 3, kind: input, shape index: {}]   ;;  %s1517_s4 = inlined_call_operand.vmem [shape: f32[1,128], index: 4, kind: input, shape index: {}]   ;;  %s1518_s5 = inlined_call_operand.hbm [shape: bf16[128,128], index: 5, kind: input, shape index: {}]   ;;  %s1519_s6 = inlined_call_operand.vmem [shape: f32[1,128], index: 6, kind: input, shape index: {}]   ;;  %s1520_s7 = inlined_call_operand.hbm [shape: bf16[64,128], index: 7, kind: output, shape index: {}]  }
   0x1   :  { %13 = vsyncpa [#allocation4], 0 }
   0x2   :  { %15 = vsyncpa [#allocation4 + $0x1], 0  ;;  %s1249_s24 = smov 0   ;;  %s1251_s25 = smov 0  }
   0x3   :  { %s1253_s26 = smov 0   ;;  %s1255_s27 = smov 0  }
   0x4 LB: > { %s1270_s28 = sadd.s32 4294967295, %s1199_s27   ;;  %s840_s29 = sadd.s32 4294967294, %s1199_s27   ;;  %s1199_s27 = sphi %s1255_s27, %s1528_s27   ;;  %s1195_s26 = sphi %s1253_s26, %s1527_s26   ;;  %s1191_s25 = sphi %s1251_s25, %s1526_s25   ;;  %s1187_s24 = sphi %s1249_s24, %s1525_s24  }
   0x5   : > { %s1274_s30 = sadd.s32 1, %s1199_s27   ;;  %s180_s8 = sadd.s32 1, %s1195_s26 }
   0x6   : > { %s177_s9 = ssub.s32 %s1199_s27, %s1274_s30  ;;  %p190_p0 = scmp.ne.s32.totalorder %s1195_s26, %s1191_s25 }
   0x7   : > { %p178_p1 = scmp.eq.s32.totalorder %s177_s9, 0  ;;  %p191_p2 = scmp.eq.s32.totalorder %s1270_s28, 1 }
   0x8   : > { %p196_p3 = scmp.ne.s32.totalorder %s1191_s25, %s1187_s24  ;;  %p197_p4 = scmp.eq.s32.totalorder %s840_s29, 1 }
   0x9   : > { %s1285_s10 = scalar_select %p178_p1, %s1195_s26, %s180_s8  }
   0xa   : > { %p1287_p5 = por %p191_p2, %p190_p0  ;;  %p1291_p6 = por %p197_p4, %p196_p3 }
   0xb   : > { %p841_p7 = scmp.ge.s32.totalorder %s1199_s27, 1  ;;  %p204_p8 = scmp.lt.s32.totalorder %s1199_s27, 3 }
   0xc   : > { %s1522_s12 = scalar_select %p1291_p6, 1, 0 }
   0xd   : > { %p1049_p9 = scmp.eq.s32.totalorder %s1270_s28, 0  ;;  %p1298_p10 = pnand %p841_p7, %p204_p8 }
   0xe   : > { %s1201_s14 = smov [#allocation2]  }
   0xf   : > { %s228_s15 = sshll.u32 %s1201_s14, 4  ;;  %p1041_p11 = pneg %p1298_p10  ;;  %s229_s15 = int_to_ptr.vmem [resolvable:$true] %s228_s15 }
  0x10   : > { %s1120_s16 = scalar_lea.vmem %s229_s15, 1024  ;;  %p1128_p3 = scmp.lt.s32.totalorder %s229_s15, %s229_s15 }
  0x11   : > { %p1042_p12 = pnand %p1049_p9, %p1041_p11  ;;  %p1121_p0 = scmp.ne.s32.totalorder %s229_s15, %s1120_s16 }
  0x12   : > { %p1129_p4 = scmp.lt.s32.totalorder %s1120_s16, %s1120_s16 }
  0x13   : > { %p1111_p13 = pneg %p1042_p12 }
  0x14   : > { %p1130_p6 = por %p1129_p4, %p1128_p3 }
  0x15   : > { %p1123_p1 = pnand %p1121_p0, %p1111_p13 }
  0x17   : > { %p1124_p2 = pneg %p1123_p1 }
  0x19   : > { %p1131_p7 = pnand %p1130_p6, %p1124_p2 }
  0x1b   : > { %1134 = shalt.err (!%p1131_p7)
}
  0x1c   : > { %s1202_s17 = smov 64   ;;  %s1203_s18 = smov 4  }
  0x1d   : > { %1044 = dma.hbm_to_vmem [thread:$0]  (!%p1042_p12), %s1518_s5, 1024, %s229_s15, [#allocation3], %s1202_s17, %s1202_s17, %s1203_s18  }
  0x1e   : > { %256 = sbr.rel (%p1298_p10) target bundleno = 902 (0x386), region = 48 }
  0x23   : > { %1178 = dma.done.wait (%p1049_p9), [#allocation3], 1024  }
  0x24   : > { %1180 = vsyncadd (%p1049_p9), [#allocation3], 4294966272  ;;  %s847_s21 = sshll.u32 %s1270_s28, 2  ;;  %v1204_v0 = vmov 0.0   ;;  %vm1205_vm0 = vmmov 0   ;;  %v1330_v1 = vld [vmem:[%s1514_s1 + $0x8] sm:$0xff]  }
  0x25   : > { %939 = vmatprep.subr.bf16.mxu0 %v1204_v0  ;;  %943 = vmatprep.mubr.msk.bf16.mxu0 %vm1205_vm0, %v1204_v0  ;;  %p289_p6 = scmp.lt.s32.totalorder %s847_s21, 7  ;;  %v1335_v2 = vld [vmem:[%s1514_s1] sm:$0xff]   ;;  %v1344_v5 = vld [vmem:[%s1516_s3 + $0x38] sm:$0xff]   ;;  %v1350_v7 = vld [vmem:[%s1516_s3 + $0x30] sm:$0xff]   ;;  %vm356_vm1 = vcmask 261120   ;;  %s885_s15 = sshll.u32 %s1270_s28, 8 }
  0x26   : > { %947 = vmatprep.subr.bf16.mxu1 %v1204_v0  ;;  %963 = vmatprep.mubr.msk.bf16.mxu1 %vm1205_vm0, %v1204_v0  ;;  %v1357_v8 = vld [vmem:[%s1516_s3 + $0x28] sm:$0xff]   ;;  %v1368_v9 = vld [vmem:[%s1516_s3 + $0x20] sm:$0xff]   ;;  %v1376_v10 = vld [vmem:[%s1516_s3 + $0x18] sm:$0xff]   ;;  %s1469_s18 = scalar_lea.hbm %s1520_s7, %s885_s15  ;;  %s1206_s20 = smov [#allocation5]  }
  0x27   : > { %s1530_s21 = smov (!%p289_p6, %s847_s21), 7  ;;  %940 = vmatpush3.bf16.msra.mxu0 %v1330_v1  ;;  %948 = vmatpush3.bf16.msra.mxu1 %v1344_v5  ;;  %v1384_v11 = vld [vmem:[%s1516_s3 + $0x10] sm:$0xff]   ;;  %v1391_v12 = vld [vmem:[%s1516_s3 + $0x8] sm:$0xff]   ;;  %v1398_v13 = vld [vmem:[%s1516_s3] sm:$0xff]  }
  0x28   : > { %s848_s22 = sshll.u32 %s1530_s21, 3  ;;  %941 = vmatprep.subr.bf16.mxu0 %v1204_v0  ;;  %949 = vmatprep.subr.bf16.mxu1 %v1204_v0  ;;  %v1101_v14 = vld [vmem:[#allocation2 + $0x38] sm:$0xff]   ;;  %v1102_v15 = vld [vmem:[#allocation2 + $0x30] sm:$0xff]   ;;  %v1103_v16 = vld [vmem:[#allocation2 + $0x28] sm:$0xff]  }
  0x29   : > { %s1325_s8 = scalar_lea.vmem %s1513_s0, %s848_s22  ;;  %v1104_v17 = vld [vmem:[#allocation2 + $0x20] sm:$0xff]   ;;  %v1105_v18 = vld [vmem:[#allocation2 + $0x18] sm:$0xff]   ;;  %v1106_v19 = vld [vmem:[#allocation2 + $0x10] sm:$0xff]   ;;  %s285_s22 = sand.u32 1, %s1191_s25  }
  0x2a   : > { %v335_v3 = vld [vmem:[%s1325_s8] sm:$0xff]  ;;  %v336_v4 = vld [vmem:[%s1325_s8 + $0x8] sm:$0xff]  ;;  %v607_v30 = vld [vmem:[%s1325_s8 + $0x10] sm:$0xff]  ;;  %s846_s9 = sshll.u32 %s285_s22, 4  ;;  %s1473_s19 = scalar_lea.sflag [#allocation4], %s285_s22 }
  0x2b   : > { %v337_v6 = vpack.c.bf16 %v336_v4, %v335_v3  ;;  %942 = vmatpush3.bf16.msra.mxu0 %v1335_v2  ;;  %950 = vmatpush3.bf16.msra.mxu1 %v1350_v7  ;;  %v1411_v20 = vld [vmem:[%s1515_s2] ss:$0 sm:$0xff]  ;;  %v608_v31 = vld [vmem:[%s1325_s8 + $0x18] sm:$0xff]  ;;  %v1107_v33 = vld [vmem:[#allocation2 + $0x8] sm:$0xff]   ;;  %s287_s13 = scalar_lea.vmem [#allocation5], %s846_s9  ;;  %s1139_s8 = sshll.u32 %s1206_s20, 4  ;;  %s1140_s8 = int_to_ptr.vmem [resolvable:$false] %s1139_s8 }
  0x2c   : > { %967 = vmatprep.subr.bf16.mxu0 %v1204_v0  ;;  %951 = vmatprep.subr.bf16.mxu1 %v1204_v0  ;;  %v609_v32 = vpack.c.bf16 %v608_v31, %v607_v30  ;;  %v1108_v34 = vld [vmem:[#allocation2] sm:$0xff]   ;;  %s766_s14 = sshll.u32 %s287_s13, 4  ;;  %s1141_s21 = scalar_lea.vmem %s1140_s8, 512  ;;  %s1464_s14 = int_to_ptr.vmem [resolvable:$true] %s766_s14 }
  0x2d   : > { %v853_v35 = vld [vmem:[%s1517_s4] ss:$0 sm:$0xff]  ;;  %s1135_s28 = scalar_lea.vmem %s1464_s14, 256  ;;  %p1142_p11 = scmp.lt.s32.totalorder %s1464_s14, %s1140_s8 }
  0x2e   : > { %944 = vmatmul.mubr.msk.bf16.vlgmr.msra.gmra.mxu0 %vm356_vm1, %v337_v6  ;;  %v862_v55 = vld [vmem:[%s1519_s6] ss:$0 sm:$0xff]  ;;  %p1136_p8 = scmp.ne.s32.totalorder %s1464_s14, %s1135_s28  ;;  %p1143_p12 = scmp.lt.s32.totalorder %s1141_s21, %s1135_s28 }
  0x2f   : > { %983 = vmatprep.mubr.msk.bf16.mxu0 %vm1205_vm0, %v1204_v0  ;;  %952 = vmatpush3.bf16.msra.mxu1 %v1357_v8 }
  0x30   : > { %953 = vmatprep.subr.bf16.mxu1 %v1204_v0  ;;  %968 = vmatpush3.bf16.msra.mxu0 %v1101_v14  ;;  %p1137_p9 = pnand %p1136_p8, %p1287_p5  ;;  %p1144_p13 = por %p1143_p12, %p1142_p11 }
  0x31   : > { %969 = vmatprep.subr.bf16.mxu0 %v1204_v0 }
  0x32   : > { %p1138_p10 = pneg %p1137_p9 }
  0x33   : > { %954 = vmatpush3.bf16.msra.mxu1 %v1368_v9 }
  0x34   : > { %955 = vmatprep.subr.bf16.mxu1 %v1204_v0  ;;  %970 = vmatpush3.bf16.msra.mxu0 %v1102_v15  ;;  %p1145_p0 = pnand %p1144_p13, %p1138_p10 }
  0x35   : > { %971 = vmatprep.subr.bf16.mxu0 %v1204_v0 }
  0x37   : > { %956 = vmatpush3.bf16.msra.mxu1 %v1376_v10 }
  0x38   : > { %957 = vmatprep.subr.bf16.mxu1 %v1204_v0  ;;  %972 = vmatpush3.bf16.msra.mxu0 %v1103_v16 }
  0x39   : > { %973 = vmatprep.subr.bf16.mxu0 %v1204_v0 }
  0x3b   : > { %958 = vmatpush3.bf16.msra.mxu1 %v1384_v11 }
  0x3c   : > { %959 = vmatprep.subr.bf16.mxu1 %v1204_v0  ;;  %974 = vmatpush3.bf16.msra.mxu0 %v1104_v17 }
  0x3d   : > { %975 = vmatprep.subr.bf16.mxu0 %v1204_v0 }
  0x3f   : > { %960 = vmatpush3.bf16.msra.mxu1 %v1391_v12 }
  0x40   : > { %961 = vmatprep.subr.bf16.mxu1 %v1204_v0  ;;  %976 = vmatpush3.bf16.msra.mxu0 %v1105_v18 }
  0x41   : > { %977 = vmatprep.subr.bf16.mxu0 %v1204_v0 }
  0x43   : > { %962 = vmatpush3.bf16.msra.mxu1 %v1398_v13 }
  0x44   : > { %987 = vmatprep.subr.bf16.mxu1 %v1204_v0  ;;  %978 = vmatpush3.bf16.msra.mxu0 %v1106_v19 }
  0x45   : > { %979 = vmatprep.subr.bf16.mxu0 %v1204_v0 }
  0x48   : > { %980 = vmatpush3.bf16.msra.mxu0 %v1107_v33 }
  0x49   : > { %981 = vmatprep.subr.bf16.mxu0 %v1204_v0 }
  0x4c   : > { %982 = vmatpush3.bf16.msra.mxu0 %v1108_v34 }
  0x4d   : > { %995 = vmatprep.subr.bf16.mxu0 %v1204_v0 }
  0xee   : > { %v394_v21 = vpop.f32.mrf.mxu0 }
  0xef   : > { %v395_v23 = vadd.f32 %v1411_v20, %v394_v21 }
  0xf0   : > { %v945_v22 = vpop.f32.mrf.mxu0 }
  0xf1   : > { %v401_v27 = vmax.f32 %v395_v23, 0.0 }
  0xf2   : > { %v397_v24 = vpop.f32.mrf.mxu0 }
  0xf3   : > { %v398_v25 = vadd.f32 %v1411_v20, %v397_v24 }
  0xf4   : > { %v946_v26 = vpop.f32.mrf.mxu0 }
  0xf5   : > { %v402_v28 = vmax.f32 %v398_v25, 0.0 }
  0xf7   : > { %v403_v29 = vpack.c.bf16 %v402_v28, %v401_v27 }
  0xf9   : > { %964 = vmatmul.mubr.bf16.vlgmr.msra.gmra.mxu1 %v403_v29 }
  0xfa   : > { %988 = vmatpush3.bf16.msra.mxu1 %v1330_v1  ;;  %991 = vmatprep.mubr.msk.bf16.mxu1 %vm1205_vm0, %v1204_v0 }
  0xfb   : > { %989 = vmatprep.subr.bf16.mxu1 %v1204_v0 }
  0xfe   : > { %990 = vmatpush3.bf16.msra.mxu1 %v1335_v2 }
  0xff   : > { %1015 = vmatprep.subr.bf16.mxu1 %v1204_v0 }
 0x101   : > { %992 = vmatmul.mubr.msk.bf16.vlgmr.msra.gmra.mxu1 %vm356_vm1, %v609_v32 }
 0x102   : > { %1016 = vmatpush3.bf16.msra.mxu1 %v1101_v14  ;;  %1031 = vmatprep.mubr.msk.bf16.mxu1 %vm1205_vm0, %v1204_v0 }
 0x103   : > { %1017 = vmatprep.subr.bf16.mxu1 %v1204_v0 }
 0x106   : > { %1018 = vmatpush3.bf16.msra.mxu1 %v1102_v15 }
 0x107   : > { %1019 = vmatprep.subr.bf16.mxu1 %v1204_v0 }
 0x10a   : > { %1020 = vmatpush3.bf16.msra.mxu1 %v1103_v16 }
 0x10b   : > { %1021 = vmatprep.subr.bf16.mxu1 %v1204_v0 }
 0x10e   : > { %1022 = vmatpush3.bf16.msra.mxu1 %v1104_v17 }
 0x10f   : > { %1023 = vmatprep.subr.bf16.mxu1 %v1204_v0 }
 0x112   : > { %1024 = vmatpush3.bf16.msra.mxu1 %v1105_v18 }
 0x113   : > { %1025 = vmatprep.subr.bf16.mxu1 %v1204_v0 }
 0x116   : > { %1026 = vmatpush3.bf16.msra.mxu1 %v1106_v19 }
 0x117   : > { %1027 = vmatprep.subr.bf16.mxu1 %v1204_v0 }
 0x11a   : > { %1028 = vmatpush3.bf16.msra.mxu1 %v1107_v33 }
 0x11b   : > { %1029 = vmatprep.subr.bf16.mxu1 %v1204_v0 }
 0x11e   : > { %1030 = vmatpush3.bf16.msra.mxu1 %v1108_v34 }
 0x1b9   : > { %v492_v36 = vpop.f32.mrf.mxu1 }
 0x1ba   : > { %v493_v38 = vadd.f32 %v853_v35, %v492_v36 }
 0x1bb   : > { %v965_v37 = vpop.f32.mrf.mxu1 }
 0x1bc   : > { %v499_v42 = vmax.f32 %v493_v38, 0.0 }
 0x1bd   : > { %v495_v39 = vpop.f32.mrf.mxu1 }
 0x1be   : > { %v496_v40 = vadd.f32 %v853_v35, %v495_v39 }
 0x1bf   : > { %v966_v41 = vpop.f32.mrf.mxu1 }
 0x1c0   : > { %v500_v43 = vmax.f32 %v496_v40, 0.0 }
 0x1c1   : > { %v647_v44 = vpop.f32.mrf.mxu1 }
 0x1c2   : > { %v501_v45 = vpack.c.bf16 %v500_v43, %v499_v42  ;;  %v648_v49 = vadd.f32 %v1411_v20, %v647_v44 }
 0x1c3   : > { %v993_v46 = vpop.f32.mrf.mxu1 }
 0x1c4   : > { %984 = vmatmul.mubr.bf16.vlgmr.msra.gmra.mxu0 %v501_v45  ;;  %v654_v51 = vmax.f32 %v648_v49, 0.0 }
 0x1c5   : > { %996 = vmatpush3.bf16.msra.mxu0 %v1344_v5  ;;  %v650_v47 = vpop.f32.mrf.mxu1  ;;  %1011 = vmatprep.mubr.msk.bf16.mxu0 %vm1205_vm0, %v1204_v0 }
 0x1c6   : > { %997 = vmatprep.subr.bf16.mxu0 %v1204_v0  ;;  %v651_v50 = vadd.f32 %v1411_v20, %v650_v47 }
 0x1c7   : > { %v994_v48 = vpop.f32.mrf.mxu1 }
 0x1c8   : > { %v655_v52 = vmax.f32 %v651_v50, 0.0 }
 0x1c9   : > { %998 = vmatpush3.bf16.msra.mxu0 %v1350_v7 }
 0x1ca   : > { %999 = vmatprep.subr.bf16.mxu0 %v1204_v0  ;;  %v656_v53 = vpack.c.bf16 %v655_v52, %v654_v51 }
 0x1cd   : > { %1000 = vmatpush3.bf16.msra.mxu0 %v1357_v8 }
 0x1ce   : > { %1001 = vmatprep.subr.bf16.mxu0 %v1204_v0 }
 0x1d1   : > { %1002 = vmatpush3.bf16.msra.mxu0 %v1368_v9 }
 0x1d2   : > { %1003 = vmatprep.subr.bf16.mxu0 %v1204_v0 }
 0x1d5   : > { %1004 = vmatpush3.bf16.msra.mxu0 %v1376_v10 }
 0x1d6   : > { %1005 = vmatprep.subr.bf16.mxu0 %v1204_v0 }
 0x1d9   : > { %1006 = vmatpush3.bf16.msra.mxu0 %v1384_v11 }
 0x1da   : > { %1007 = vmatprep.subr.bf16.mxu0 %v1204_v0 }
 0x1dd   : > { %1008 = vmatpush3.bf16.msra.mxu0 %v1391_v12 }
 0x1de   : > { %1009 = vmatprep.subr.bf16.mxu0 %v1204_v0 }
 0x1e1   : > { %1010 = vmatpush3.bf16.msra.mxu0 %v1398_v13 }
 0x1e4   : > { %1012 = vmatmul.mubr.bf16.vlgmr.msra.gmra.mxu0 %v656_v53 }
 0x284   : > { %v590_v54 = vpop.f32.mrf.mxu0 }
 0x285   : > { %v591_v58 = vadd.f32 %v862_v55, %v590_v54 }
 0x286   : > { %v985_v56 = vpop.f32.mrf.mxu0 }
 0x288   : > { %v593_v57 = vpop.f32.mrf.mxu0 }
 0x289   : > { %v594_v59 = vadd.f32 %v862_v55, %v593_v57 }
 0x28a   : > { %v986_v60 = vpop.f32.mrf.mxu0 }
 0x28b   : > { %v889_v61 = vpack.c.bf16 %v594_v59, %v591_v58 }
 0x28d   : > { %890 = vst [vmem:[%s287_s13] sm:$0xff] %v889_v61  }
 0x2a4   : > { %v691_v62 = vpop.f32.mrf.mxu0 }
 0x2a5   : > { %v692_v0 = vadd.f32 %v853_v35, %v691_v62 }
 0x2a6   : > { %v1013_v63 = vpop.f32.mrf.mxu0 }
 0x2a7   : > { %v698_v4 = vmax.f32 %v692_v0, 0.0 }
 0x2a8   : > { %v694_v1 = vpop.f32.mrf.mxu0 }
 0x2a9   : > { %v695_v2 = vadd.f32 %v853_v35, %v694_v1 }
 0x2aa   : > { %v1014_v3 = vpop.f32.mrf.mxu0 }
 0x2ab   : > { %v699_v5 = vmax.f32 %v695_v2, 0.0 }
 0x2ad   : > { %v700_v6 = vpack.c.bf16 %v699_v5, %v698_v4 }
 0x2af   : > { %1032 = vmatmul.mubr.bf16.vlgmr.msra.gmra.mxu1 %v700_v6 }
 0x36f   : > { %v735_v7 = vpop.f32.mrf.mxu1 }
 0x370   : > { %v736_v10 = vadd.f32 %v862_v55, %v735_v7 }
 0x371   : > { %v1033_v8 = vpop.f32.mrf.mxu1 }
 0x373   : > { %v738_v9 = vpop.f32.mrf.mxu1 }
 0x374   : > { %v739_v11 = vadd.f32 %v862_v55, %v738_v9 }
 0x375   : > { %v1034_v12 = vpop.f32.mrf.mxu1 }
 0x376   : > { %v894_v13 = vpack.c.bf16 %v739_v11, %v736_v10 }
 0x378   : > { %896 = vst [vmem:[%s287_s13 + $0x8] sm:$0xff] %v894_v13  }
 0x379   : > { %1148 = shalt.err (!%p1145_p0)
}
 0x37a   : > { %s1149_s22 = scalar_lea.hbm %s1469_s18, 256  ;;  %s1153_s9 = scalar_lea.hbm %s1520_s7, 512 }
 0x37b   : > { %p1150_p1 = scmp.ne.s32.totalorder %s1469_s18, %s1149_s22  ;;  %p1154_p4 = scmp.lt.s32.totalorder %s1469_s18, %s1520_s7 }
 0x37c   : > { %p1155_p7 = scmp.lt.s32.totalorder %s1153_s9, %s1149_s22 }
 0x37d   : > { %p1151_p2 = pnand %p1150_p1, %p1287_p5 }
 0x37e   : > { %p1156_p6 = por %p1155_p7, %p1154_p4 }
 0x37f   : > { %p1152_p3 = pneg %p1151_p2 }
 0x381   : > { %p1157_p8 = pnand %p1156_p6, %p1152_p3 }
 0x383   : > { %1160 = shalt.err (!%p1157_p8)
}
 0x384   : > { %s1207_s16 = smov 64   ;;  %s1208_s17 = smov 4  }
 0x385   : > { %1039 = dma.vmem_to_hbm [thread:$0]  (%p1287_p5), %s1464_s14, 256, %s1469_s18, %s1473_s19, %s1207_s16, %s1207_s16, %s1208_s17  }
 0x386 PF: > { %p1051_p9 = scmp.ge.s32.totalorder %s1199_s27, 2  ;;  %s781_s28 = sand.u32 1, %s1187_s24  }
 0x387   : > { %p1524_p10 = scmp.ne.s32.totalorder %s1522_s12, 0  ;;  %s782_s20 = scalar_lea.sflag [#allocation4], %s781_s28 }
 0x389   : > { %p1046_p11 = pnand %p1051_p9, %p1524_p10 }
 0x38b   : > { %p1047_p12 = pneg %p1046_p11 }
 0x38d   : > { %1182 = dma.done.wait (%p1047_p12), %s782_s20, 256  }
 0x38e   : > { %1184 = vsyncadd (%p1047_p12), %s782_s20, 4294967040  ;;  %p18_p13 = scmp.ge.s32.totalorder %s1274_s30, 4   ;;  %s1525_s24 = smov %s1191_s25 }
 0x38f   : > { %s1526_s25 = smov %s1195_s26  ;;  %s1527_s26 = smov %s1285_s10 }
 0x390   : > { %s1528_s27 = smov %s1274_s30  ;;  %20 = sbr.rel (!%p18_p13) target bundleno = 4 (0x4), region = 88 }
 0x395   :  { %787 = vsyncpa [#allocation3], 1 }
 0x396   :  { %789 = vsyncpa [#allocation3 + $0x1], 1 }
 0x397   :  { %790 = vsyncpa [#allocation4], 1 }
 0x398   :  { %792 = vsyncpa [#allocation4 + $0x1], 1 }

</bundles_post_ra>
